<compile_context>
chip_gen: v7x
topology: tpu7x:2x2x1
jax: 0.10.0
libtpu: 0.0.40
codegen_flags: <defaults>
</compile_context>

<pallas_src>
import functools

import jax
import jax.numpy as jnp
from jax.experimental import pallas as pl
from jax.experimental.pallas import tpu as pltpu


# ----------------------------- kernels -----------------------------

def _support1_kernel(x_ref, w1_ref, s1_ref):
    # s1_tile = x_tile @ W1   (bf16 MXU feeds, f32 accumulation)
    s1_ref[...] = jnp.dot(
        x_ref[...], w1_ref[...], preferred_element_type=jnp.float32
    ).astype(s1_ref.dtype)


def _layer1_fused_kernel(adj_ref, s1_ref, w2_ref, s2_ref, acc_ref):
    # acc += adj_tile(tm,tk) @ s1_slice(tk,H); at the last K step:
    # s2_tile = relu(acc).bf16 @ W2_pad   (h never written to HBM)
    k = pl.program_id(1)

    @pl.when(k == 0)
    def _():
        acc_ref[...] = jnp.zeros_like(acc_ref)

    acc_ref[...] += jnp.dot(
        adj_ref[...], s1_ref[...], preferred_element_type=jnp.float32
    )

    @pl.when(k == pl.num_programs(1) - 1)
    def _():
        h = jnp.maximum(acc_ref[...], 0.0).astype(jnp.bfloat16)
        s2_ref[...] = jnp.dot(
            h, w2_ref[...], preferred_element_type=jnp.float32
        ).astype(s2_ref.dtype)


def _layer2_kernel(adj_ref, s2_ref, out_ref, acc_ref, *, num_valid):
    # acc += adj_tile(tm,tk) @ s2_slice(tk,CP); at the last K step: pad-lane-aware
    # log_softmax over axis=1 in f32, lane-dense store.
    k = pl.program_id(1)

    @pl.when(k == 0)
    def _():
        acc_ref[...] = jnp.zeros_like(acc_ref)

    acc_ref[...] += jnp.dot(
        adj_ref[...], s2_ref[...], preferred_element_type=jnp.float32
    )

    @pl.when(k == pl.num_programs(1) - 1)
    def _():
        logits = acc_ref[...]
        lane = jax.lax.broadcasted_iota(jnp.int32, logits.shape, 1)
        masked = jnp.where(lane < num_valid, logits, -1e30)
        m = jnp.max(masked, axis=1, keepdims=True)
        shifted = masked - m
        lse = jnp.log(jnp.sum(jnp.exp(shifted), axis=1, keepdims=True))
        out_ref[...] = (shifted - lse).astype(out_ref.dtype)


# ----------------------------- wrapper -----------------------------

def _round_up(x, m):
    return ((x + m - 1) // m) * m


def _pick_tile(padded, target, multiple):
    """Largest tile <= target that divides `padded` and is a multiple of `multiple`."""
    t = min(target, padded)
    t = (t // multiple) * multiple
    while t > multiple:
        if padded % t == 0:
            return t
        t -= multiple
    return multiple  # `padded` is a multiple of `multiple` by construction


def gcn_forward(adj, x, w1, w2, *, row_tile=256, k_tile=512):
    """log_softmax(adj @ relu(adj @ (x @ W1)) @ W2, axis=1) with Pallas kernels."""
    N = adj.shape[0]
    F_in = x.shape[1]
    H = w1.shape[1]
    C = w2.shape[1]

    # Pad the node axis to a multiple of 128 (lane-dense adj columns, no whole-array
    # fallback for non-divisible N) and the class axis to 128 lanes.
    NP = _round_up(max(N, 128), 128)
    CP = _round_up(max(C, 128), 128)

    # Row tile (sublane axis, multiple of 8) and contraction tile (lane axis of the adj
    # block, multiple of 128).  Defaults 256 / 512 amortize per-step overhead and keep
    # per-step VMEM at a few hundred KiB -> fits v5e's 16 MiB scoped default and leaves
    # plenty of headroom on v7x's 64 MiB.
    tm = _pick_tile(NP, row_tile, 8)
    tk = _pick_tile(NP, k_tile, 128)
    n_rows = NP // tm
    n_k = NP // tk

    # bf16 MXU feeds; zero padding keeps all pad contributions exactly zero.
    adj_p = jnp.zeros((NP, NP), jnp.bfloat16).at[:N, :N].set(adj.astype(jnp.bfloat16))
    x_p = jnp.zeros((NP, F_in), jnp.bfloat16).at[:N, :].set(x.astype(jnp.bfloat16))
    w1_b = w1.astype(jnp.bfloat16)
    w2_p = jnp.zeros((H, CP), jnp.bfloat16).at[:, :C].set(w2.astype(jnp.bfloat16))

    row_parallel = pltpu.CompilerParams(dimension_semantics=("parallel",))
    stream_params = pltpu.CompilerParams(
        dimension_semantics=("parallel", "arbitrary")
    )

    # ---- support1 = x @ W1, row-tiled & pipelined (megacore-shardable) ----
    s1 = pl.pallas_call(
        _support1_kernel,
        out_shape=jax.ShapeDtypeStruct((NP, H), jnp.bfloat16),
        grid=(n_rows,),
        in_specs=[
            pl.BlockSpec((tm, F_in), lambda i: (i, 0)),
            pl.BlockSpec((F_in, H), lambda i: (0, 0)),
        ],
        out_specs=pl.BlockSpec((tm, H), lambda i: (i, 0)),
        compiler_params=row_parallel,
    )(x_p, w1_b)

    # TODO(synk): training-mode dropout (random mask) not implemented; eval identity.

    # ---- layer 1 fused: s2 = relu(adj @ s1) @ W2_pad  (K-tiled, h stays in VMEM) ----
    s2 = pl.pallas_call(
        _layer1_fused_kernel,
        out_shape=jax.ShapeDtypeStruct((NP, CP), jnp.bfloat16),
        grid=(n_rows, n_k),
        in_specs=[
            pl.BlockSpec((tm, tk), lambda i, k: (i, k)),
            pl.BlockSpec((tk, H), lambda i, k: (k, 0)),
            pl.BlockSpec((H, CP), lambda i, k: (0, 0)),
        ],
        out_specs=pl.BlockSpec((tm, CP), lambda i, k: (i, 0)),
        scratch_shapes=[pltpu.VMEM((tm, H), jnp.float32)],
        compiler_params=stream_params,
    )(adj_p, s1, w2_p)

    # ---- layer 2: out = log_softmax(adj @ s2)  (K-tiled, masked pad lanes) ----
    out_padded = pl.pallas_call(
        functools.partial(_layer2_kernel, num_valid=C),
        out_shape=jax.ShapeDtypeStruct((NP, CP), jnp.float32),
        grid=(n_rows, n_k),
        in_specs=[
            pl.BlockSpec((tm, tk), lambda i, k: (i, k)),
            pl.BlockSpec((tk, CP), lambda i, k: (k, 0)),
        ],
        out_specs=pl.BlockSpec((tm, CP), lambda i, k: (i, 0)),
        scratch_shapes=[pltpu.VMEM((tm, CP), jnp.float32)],
        compiler_params=stream_params,
    )(adj_p, s2)

    return out_padded[:N, :C]


# ----------------------------- setup helpers -----------------------------

def make_params(key, input_size, hidden_size, num_class):
    # Mirrors GCNLayer.reset_parameters: uniform(-std, std), std = 1/sqrt(out_features)
    k1, k2 = jax.random.split(key)
    std1 = 1.0 / (hidden_size ** 0.5)
    std2 = 1.0 / (num_class ** 0.5)
    w1 = jax.random.uniform(k1, (input_size, hidden_size), jnp.float32, -std1, std1)
    w2 = jax.random.uniform(k2, (hidden_size, num_class), jnp.float32, -std2, std2)
    return w1, w2


def make_graph(key, num_nodes, input_size):
    ka, kx = jax.random.split(key)
    # Random binary adjacency + self loops, row-normalized (dense stand-in for spmm).
    a = (jax.random.uniform(ka, (num_nodes, num_nodes)) < 0.1).astype(jnp.float32)
    a = jnp.maximum(a, a.T) + jnp.eye(num_nodes, dtype=jnp.float32)
    deg = jnp.sum(a, axis=1, keepdims=True)
    adj = a / deg
    x = jax.random.normal(kx, (num_nodes, input_size), jnp.float32)
    return adj, x


if __name__ == "__main__":
    N = 192         # number of nodes (not a multiple of 128 -> exercises padding path)
    INPUT = 32      # input feature size
    HIDDEN = 32     # hidden size
    NUM_CLASS = 8   # number of classes

    key = jax.random.PRNGKey(0)
    k_graph, k_params = jax.random.split(key)

    adj, x = make_graph(k_graph, N, INPUT)
    w1, w2 = make_params(k_params, INPUT, HIDDEN, NUM_CLASS)

    # row_tile=64, k_tile=128 -> padded N=256, grid=(4, 2): exercises the K-tiled
    # accumulator path, the parallel row axis and the tail-padding at small scale.
    out = gcn_forward(adj, x, w1, w2, row_tile=64, k_tile=128)
    jax.block_until_ready(out)
    assert out.shape == (N, NUM_CLASS)

    # Pure-JAX reference with the same bf16 MXU feeds / f32 accumulation / bf16
    # intermediates as the fused kernel path.
    adj_b = adj.astype(jnp.bfloat16)
    s1_ref = jnp.dot(x.astype(jnp.bfloat16), w1.astype(jnp.bfloat16),
                     preferred_element_type=jnp.float32).astype(jnp.bfloat16)
    h_ref = jnp.maximum(
        jnp.dot(adj_b, s1_ref, preferred_element_type=jnp.float32), 0.0
    ).astype(jnp.bfloat16)
    s2_ref = jnp.dot(h_ref, w2.astype(jnp.bfloat16),
                     preferred_element_type=jnp.float32).astype(jnp.bfloat16)
    logits_ref = jnp.dot(adj_b, s2_ref, preferred_element_type=jnp.float32)
    ref = jax.nn.log_softmax(logits_ref, axis=1)

    err = jnp.max(jnp.abs(out - ref))
    assert err < 2e-3, f"max abs error {err}"

    print("KERNEL_OK")
</pallas_src>

<mosaic_0001>
module attributes {stable_mosaic.version = 11 : i64} {
  func.func @_support1_kernel(%arg0: i32, %arg1: memref<64x32xbf16, #tpu.memory_space<vmem>>, %arg2: memref<32x32xbf16, #tpu.memory_space<vmem>>, %arg3: memref<64x32xbf16, #tpu.memory_space<vmem>>) attributes {dimension_semantics = [#tpu.dimension_semantics<parallel>], iteration_bounds = array<i64: 4>, scalar_prefetch = 0 : i64, scratch_operands = 0 : i64, tpu.core_type = #tpu.core_type<tc>, window_params = [{transform_indices = @transform_0, window_bounds = array<i64: 64, 32>}, {pipeline_mode = #tpu.pipeline_mode<synchronous>, transform_indices = @transform_1, window_bounds = array<i64: 32, 32>}, {transform_indices = @transform_2, window_bounds = array<i64: 64, 32>}]} {
    %c0 = arith.constant 0 : index
    %c0_0 = arith.constant 0 : index
    %0 = vector.load %arg1[%c0, %c0_0] : memref<64x32xbf16, #tpu.memory_space<vmem>>, vector<64x32xbf16>
    %c0_1 = arith.constant 0 : index
    %c0_2 = arith.constant 0 : index
    %1 = vector.load %arg2[%c0_1, %c0_2] : memref<32x32xbf16, #tpu.memory_space<vmem>>, vector<32x32xbf16>
    %cst = arith.constant dense<0.000000e+00> : vector<64x32xf32>
    %2 = tpu.matmul %0, %1, %cst {dimension_numbers = #tpu.dot_dimension_numbers<[1], [0], [0], [1], [0, 0, 1, 1], [], []>} : vector<64x32xbf16>, vector<32x32xbf16>, vector<64x32xf32> -> vector<64x32xf32>
    %3 = arith.truncf %2 : vector<64x32xf32> to vector<64x32xbf16>
    %c0_3 = arith.constant 0 : index
    %c0_4 = arith.constant 0 : index
    %4 = vector.load %arg3[%c0_3, %c0_4] : memref<64x32xbf16, #tpu.memory_space<vmem>>, vector<64x32xbf16>
    tpu.vector_store %arg3[%c0_3, %c0_4], %3 {strides = array<i32>} : memref<64x32xbf16, #tpu.memory_space<vmem>>, vector<64x32xbf16>,
    return
  }
  func.func @transform_0(%arg0: i32) -> (i32, i32) {
    %c0_i32 = arith.constant 0 : i32
    %c0_i32_0 = arith.constant 0 : i32
    return %arg0, %c0_i32 : i32, i32
  }
  func.func @transform_1(%arg0: i32) -> (i32, i32) {
    %c0_i32 = arith.constant 0 : i32
    %c0_i32_0 = arith.constant 0 : i32
    %c0_i32_1 = arith.constant 0 : i32
    return %c0_i32, %c0_i32_0 : i32, i32
  }
  func.func @transform_2(%arg0: i32) -> (i32, i32) {
    %c0_i32 = arith.constant 0 : i32
    %c0_i32_0 = arith.constant 0 : i32
    return %arg0, %c0_i32 : i32, i32
  }
}

</mosaic_0001>

<bundles_post_ra>
// kernel: tpu_custom_call.1
= control target key start
LH: loop header
LB: loop body
LE: loop exit
PB: predicated region body
PF: predicated region fallthrough
CT: control target
= control target key end

     0   :  { %s463_s9 = smov 0   ;;  %s494_s0 = inlined_call_operand.vmem [shape: bf16[256,32], index: 0, kind: input, shape index: {}]   ;;  %s495_s1 = inlined_call_operand.vmem [shape: bf16[32,32], index: 1, kind: input, shape index: {}]   ;;  %s496_s2 = inlined_call_operand.vmem [shape: bf16[256,32], index: 2, kind: output, shape index: {}]  }
   0x1 LB: > { %s367_s10 = sadd.s32 4294967295, %s446_s9   ;;  %p371_p0 = scmp.ge.s32.totalorder %s446_s9, 1  ;;  %s446_s9 = sphi %s463_s9, %s12_s9  }
   0x2   : > { %p113_p1 = scmp.lt.s32.totalorder %s446_s9, 5 }
   0x4   : > { %p114_p2 = pnand %p371_p0, %p113_p1 }
   0x5   : > { %v434_v0 = vld [vmem:[%s495_s1] sm:$0xff] (!%p114_p2)   ;;  %s372_s13 = sshll.u32 (!%p114_p2), %s367_s10, 3  ;;  %v435_v1 = vld [vmem:[%s495_s1 + $0x8] sm:$0xff] (!%p114_p2)   ;;  %vm192_vm0 = vcmask (!%p114_p2), 261120   ;;  %vm302_vm1 = vcmask (!%p114_p2), 257024  }
   0x6   : > { %117 = sbr.rel (%p114_p2) target bundleno = 236 (0xec), region = 28  ;;  %p136_p3 = scmp.lt.s32.totalorder (!%p114_p2), %s372_s13, 31  ;;  %410 = vmatprep.subr.bf16.mxu0 (!%p114_p2), %v434_v0  ;;  %422 = vmatprep.subr.bf16.mxu1 (!%p114_p2), %v434_v0 }
   0x7   : > { %411 = vmatpush3.bf16.msra.mxu0 (!%p114_p2), %v434_v0  ;;  %424 = vmatpush3.bf16.msra.mxu1 (!%p114_p2), %v434_v0 }
   0x8   : > { %412 = vmatprep.subr.bf16.mxu0 (!%p114_p2), %v435_v1  ;;  %423 = vmatprep.subr.bf16.mxu1 (!%p114_p2), %v435_v1 }
   0xb   : > { %413 = vmatpush3.bf16.msra.mxu0 (!%p114_p2), %v435_v1  ;;  %425 = vmatpush3.bf16.msra.mxu1 (!%p114_p2), %v435_v1 }
   0xd   : > { %s498_s13 = smov (!%p136_p3, %s372_s13), 31 }
   0xe   : > { %s373_s16 = sshll.u32 %s498_s13, 2 }
   0xf   : > { %s139_s19 = scalar_lea.vmem %s494_s0, %s373_s16  ;;  %s145_s22 = scalar_lea.vmem %s496_s2, %s373_s16 }
  0x10   : > { %v436_v2 = vld [vmem:[%s139_s19] sm:$0xff]   ;;  %v437_v3 = vld [vmem:[%s139_s19 + $0x10] sm:$0xff]   ;;  %v438_v4 = vld [vmem:[%s139_s19 + $0x8] sm:$0xff]  }
  0x11   : > { %414 = vmatprep.mubr.msk.bf16.mxu0 %vm192_vm0, %v436_v2  ;;  %418 = vmatprep.mubr.msk.bf16.mxu1 %vm192_vm0, %v437_v3  ;;  %v439_v5 = vld [vmem:[%s139_s19 + $0x18] sm:$0xff]  }
  0x12   : > { %415 = vmatmul.mubr.msk.bf16.vlgmr.msra.gmra.mrb[0].mxu0 %vm192_vm0, %v438_v4  ;;  %419 = vmatmul.mubr.msk.bf16.vlgmr.msra.gmra.mrb[0].mxu1 %vm192_vm0, %v439_v5 }
  0xe5   : > { %v416_v6 = vpop.f32.mrb[0].mxu0  ;;  %v420_v8 = vpop.f32.mrb[0].mxu1 }
  0xe6   : > { %v398_v7 = vpack.c.bf16 %v416_v6, %v416_v6  ;;  %v239_v9 = vpop.f32.mrb[1].mxu0  ;;  %v402_v10 = vpack.c.bf16 %v420_v8, %v420_v8  ;;  %v255_v12 = vpop.f32.mrb[1].mxu1 }
  0xe7   : > { %v396_v11 = vpack.c.bf16 %v239_v9, %v239_v9  ;;  %v417_v13 = vpop.f32.mrb[2].mxu0  ;;  %v400_v14 = vpack.c.bf16 %v255_v12, %v255_v12  ;;  %v421_v16 = vpop.f32.mrb[2].mxu1 }
  0xe8   : > { %305 = vst.msk [vmem:[%s145_s22 + $0x8] sm:$0xf] %vm302_vm1, %v398_v7  ;;  %v399_v15 = vpack.c.bf16 %v417_v13, %v417_v13  ;;  %v242_v17 = vpop.f32.mrb[3].mxu0  ;;  %309 = vst.msk [vmem:[%s145_s22 + $0x18] sm:$0xf] %vm302_vm1, %v402_v10  ;;  %v403_v18 = vpack.c.bf16 %v421_v16, %v421_v16  ;;  %v258_v20 = vpop.f32.mrb[3].mxu1 }
  0xe9   : > { %303 = vst.msk [vmem:[%s145_s22] sm:$0xf] %vm302_vm1, %v396_v11  ;;  %v397_v19 = vpack.c.bf16 %v242_v17, %v242_v17  ;;  %307 = vst.msk [vmem:[%s145_s22 + $0x10] sm:$0xf] %vm302_vm1, %v400_v14  ;;  %v401_v21 = vpack.c.bf16 %v258_v20, %v258_v20 }
  0xea   : > { %306 = vst.msk [vmem:[%s145_s22 + $0xc] sm:$0xf] %vm302_vm1, %v399_v15  ;;  %310 = vst.msk [vmem:[%s145_s22 + $0x1c] sm:$0xf] %vm302_vm1, %v403_v18 }
  0xeb   : > { %304 = vst.msk [vmem:[%s145_s22 + $0x4] sm:$0xf] %vm302_vm1, %v397_v19  ;;  %308 = vst.msk [vmem:[%s145_s22 + $0x14] sm:$0xf] %vm302_vm1, %v401_v21 }
  0xec PF: > { %s12_s9 = sadd.s32 1, %s446_s9  }
  0xed   : > { %p9_p4 = scmp.ge.s32.totalorder %s12_s9, 6  }
  0xef   :  { %11 = sbr.rel (!%p9_p4) target bundleno = 1 (0x1), region = 58 }

</bundles_post_ra>
